<compile_context>
chip_gen: v5e
topology: v5e:2x2
jax: 0.10.0
libtpu: 0.0.40
codegen_flags: <defaults>
</compile_context>

<pallas_src>
import jax
import jax.numpy as jnp
from jax.experimental import pallas as pl
from jax.experimental.pallas import tpu as pltpu


def _round_up(x, m):
    return ((x + m - 1) // m) * m


def _cdiv(a, b):
    return -(-a // b)


def _block_diag(w, P):
    """(din, dout) -> (P*din, P*dout) block-diagonal replication of w."""
    if P == 1:
        return w
    din, dout = w.shape
    eye = jnp.eye(P, dtype=w.dtype)
    bd = eye[:, :, None, None] * w[None, None, :, :]        # (P, P, din, dout)
    return bd.transpose(0, 2, 1, 3).reshape(P * din, P * dout)


def _mlp_kernel(x_ref, w1_ref, b1_ref, w2_ref, b2_ref, w3_ref, b3_ref, o_ref):
    """Whole packed MLP for one batch tile: 3 lane-dense matmuls + bias + ReLU.

    All operands live in VMEM; weights are block-diagonal so P original rows
    are processed per 128-lane row with plain (batch, feature) matmuls.
    """
    x = x_ref[...].astype(jnp.bfloat16)                              # (R, P*in)

    h = jnp.dot(x, w1_ref[...], preferred_element_type=jnp.float32)
    h = jnp.maximum(h + b1_ref[...], 0.0)                            # (R, P*h1) f32

    h = jnp.dot(h.astype(jnp.bfloat16), w2_ref[...],
                preferred_element_type=jnp.float32)
    h = jnp.maximum(h + b2_ref[...], 0.0)                            # (R, P*h2) f32

    y = jnp.dot(h.astype(jnp.bfloat16), w3_ref[...],
                preferred_element_type=jnp.float32)
    y = jnp.maximum(y + b3_ref[...], 0.0)                            # (R, P) f32

    o_ref[...] = y.astype(o_ref.dtype)


def _vmem_need_bytes(tile_R, Wx, Wh1, Wh2, Wy, in_itemsize, weights_bytes):
    """Rough peak VMEM: double-buffered x/out blocks + in-kernel temporaries."""
    pad = lambda n: _round_up(max(n, 1), 128)
    x_blk = tile_R * pad(Wx) * in_itemsize
    o_blk = tile_R * pad(Wy) * 4
    # bf16 x copy, f32+bf16 h1, f32+bf16 h2, f32 y (worst-case sum of temps)
    tmp = tile_R * (pad(Wx) * 2 + pad(Wh1) * 6 + pad(Wh2) * 6 + pad(Wy) * 4)
    return 2 * (x_blk + o_blk) + tmp + weights_bytes


def neural_linear_regressor(t, params, *, in_dim, batch_tile=16384):
    """Pallas-backed forward pass. `t` may be any shape; it is flattened to
    (-1, in_dim) exactly like the PyTorch module's t.view(-1, in_dim)."""
    w1, b1, w2, b2, w3, b3 = params
    h1 = w1.shape[1]
    h2 = w2.shape[1]

    x = t.reshape(-1, in_dim)          # keep native dtype; kernel casts to bf16
    B = x.shape[0]
    itemsize = x.dtype.itemsize

    # ---- row-packing factor: fold P original rows into one 128-lane row ----
    P = max(1, 128 // in_dim) if in_dim <= 128 else 1
    Wx, Wh1, Wh2, Wy = P * in_dim, P * h1, P * h2, P

    # One-time block-diagonal bf16 weights + tiled f32 biases (tiny).
    w1b = _block_diag(w1, P).astype(jnp.bfloat16)          # (Wx,  Wh1)
    w2b = _block_diag(w2, P).astype(jnp.bfloat16)          # (Wh1, Wh2)
    w3b = _block_diag(w3, P).astype(jnp.bfloat16)          # (Wh2, Wy)
    b1b = jnp.tile(b1.reshape(1, h1).astype(jnp.float32), (1, P))
    b2b = jnp.tile(b2.reshape(1, h2).astype(jnp.float32), (1, P))
    b3b = jnp.tile(b3.reshape(1, 1).astype(jnp.float32), (1, P))
    weights_bytes = ((w1b.size + w2b.size + w3b.size) * 2
                     + (b1b.size + b2b.size + b3b.size) * 4)

    # ---- pick the packed-row tile ----
    R = _cdiv(B, P)                                        # total packed rows
    target_R = max(8, _round_up(batch_tile, 8 * P) // P)   # ~batch_tile rows/step
    # Ensure >= 2 grid steps when there is enough work (v7x has 2 TensorCores).
    half_R = _round_up(_cdiv(R, 2), 8)
    tile_R = max(8, min(target_R, half_R))

    # Shrink the tile if it would blow the (v7x-safe) 48 MiB VMEM cap.
    cap = 48 << 20
    while tile_R > 256 and _vmem_need_bytes(
            tile_R, Wx, Wh1, Wh2, Wy, itemsize, weights_bytes) > cap:
        tile_R = max(256, _round_up(tile_R // 2, 8))

    Rp = _round_up(R, tile_R)
    num_tiles = Rp // tile_R

    # Pad flattened rows and fold P rows per lane-dense packed row (free).
    pad_rows = Rp * P - B
    if pad_rows:
        x = jnp.pad(x, ((0, pad_rows), (0, 0)))
    xp = x.reshape(Rp, Wx)

    # ---- advisory cost + explicit VMEM limit ----
    flops = 2 * Rp * (Wx * Wh1 + Wh1 * Wh2 + Wh2 * Wy)
    bytes_accessed = Rp * Wx * itemsize + Rp * Wy * 4 + weights_bytes
    need = _vmem_need_bytes(tile_R, Wx, Wh1, Wh2, Wy, itemsize, weights_bytes)
    vmem_limit = int(min(cap, max(need * 3 // 2, 32 << 20)))

    def _rep(shape):  # resident weight/bias blocks (constant index map)
        return pl.BlockSpec(shape, lambda i: (0, 0))

    fwd = pl.pallas_call(
        _mlp_kernel,
        out_shape=jax.ShapeDtypeStruct((Rp, Wy), jnp.float32),
        grid_spec=pltpu.PrefetchScalarGridSpec(
            num_scalar_prefetch=0,
            grid=(num_tiles,),
            in_specs=[
                pl.BlockSpec((tile_R, Wx), lambda i: (i, 0)),   # packed x tile
                _rep((Wx, Wh1)), _rep((1, Wh1)),                # W1_bd, b1
                _rep((Wh1, Wh2)), _rep((1, Wh2)),               # W2_bd, b2
                _rep((Wh2, Wy)), _rep((1, Wy)),                 # W3_bd, b3
            ],
            out_specs=pl.BlockSpec((tile_R, Wy), lambda i: (i, 0)),
        ),
        compiler_params=pltpu.CompilerParams(
            dimension_semantics=("parallel",),
            vmem_limit_bytes=vmem_limit),
        cost_estimate=pl.CostEstimate(
            flops=int(flops), transcendentals=0,
            bytes_accessed=int(bytes_accessed)),
    )
    out = fwd(xp, w1b, b1b, w2b, b2b, w3b, b3b)            # (Rp, P)
    # Row-major unpack: element (r, p) is original row r*P + p.
    return out.reshape(-1)[:B].reshape(B, 1)


def init_params(key, in_dim, n_hidden_units):
    """Deterministic init matching the PyTorch module:
    - Linear weight: xavier_uniform_
    - Linear bias:   PyTorch default uniform(-1/sqrt(fan_in), 1/sqrt(fan_in))
    Weights are returned transposed to (in, out) for the kernel."""
    dims = [in_dim] + list(n_hidden_units) + [1]
    params = []
    for idx in range(len(dims) - 1):
        fan_in, fan_out = dims[idx], dims[idx + 1]
        key, kw, kb = jax.random.split(key, 3)
        limit = (6.0 / (fan_in + fan_out)) ** 0.5  # xavier_uniform
        w = jax.random.uniform(kw, (fan_in, fan_out), jnp.float32, -limit, limit)
        b_bound = 1.0 / (fan_in ** 0.5)
        b = jax.random.uniform(kb, (1, fan_out), jnp.float32, -b_bound, b_bound)
        params.extend([w, b])
    return tuple(params)


def reference_forward(t, params, in_dim):
    """Pure-JAX f32 reference (activation after every Linear, like the module)."""
    x = t.reshape(-1, in_dim).astype(jnp.float32)
    w1, b1, w2, b2, w3, b3 = params
    h = jnp.maximum(x @ w1 + b1, 0.0)
    h = jnp.maximum(h @ w2 + b2, 0.0)
    h = jnp.maximum(h @ w3 + b3, 0.0)
    return h


if __name__ == "__main__":
    IN_DIM = 32
    HIDDEN = [64, 32]

    key = jax.random.PRNGKey(0)
    k_params, k_x = jax.random.split(key)

    params = init_params(k_params, IN_DIM, HIDDEN)

    # Small input with leading structure; flattened inside the wrapper via
    # reshape(-1, in_dim), same as the module's t.view(-1, in_dim).
    x = jax.random.normal(k_x, (2, 8, IN_DIM), jnp.float32)  # -> (16, 32) rows

    out = neural_linear_regressor(x, params, in_dim=IN_DIM)
    out = jax.block_until_ready(out)

    ref = reference_forward(x, params, IN_DIM)
    assert out.shape == (16, 1), out.shape
    # bf16 MXU operands with f32 accumulation -> ~1e-2-level error vs f32 ref.
    assert jnp.allclose(out, ref, atol=5e-2, rtol=5e-2), "mismatch vs reference"

    print("KERNEL_OK")
</pallas_src>

<mosaic_0001>
module attributes {stable_mosaic.version = 11 : i64} {
  func.func @_mlp_kernel(%arg0: i32, %arg1: memref<8x128xf32, #tpu.memory_space<vmem>>, %arg2: memref<128x256xbf16, #tpu.memory_space<vmem>>, %arg3: memref<1x256xf32, #tpu.memory_space<vmem>>, %arg4: memref<256x128xbf16, #tpu.memory_space<vmem>>, %arg5: memref<1x128xf32, #tpu.memory_space<vmem>>, %arg6: memref<128x4xbf16, #tpu.memory_space<vmem>>, %arg7: memref<1x4xf32, #tpu.memory_space<vmem>>, %arg8: memref<8x4xf32, #tpu.memory_space<vmem>>) attributes {dimension_semantics = [#tpu.dimension_semantics<parallel>], iteration_bounds = array<i64: 1>, scalar_prefetch = 0 : i64, scratch_operands = 0 : i64, tpu.core_type = #tpu.core_type<tc>, window_params = [{transform_indices = @transform_0, window_bounds = array<i64: 8, 128>}, {pipeline_mode = #tpu.pipeline_mode<synchronous>, transform_indices = @transform_1, window_bounds = array<i64: 128, 256>}, {pipeline_mode = #tpu.pipeline_mode<synchronous>, transform_indices = @transform_2, window_bounds = array<i64: 1, 256>}, {pipeline_mode = #tpu.pipeline_mode<synchronous>, transform_indices = @transform_3, window_bounds = array<i64: 256, 128>}, {pipeline_mode = #tpu.pipeline_mode<synchronous>, transform_indices = @transform_4, window_bounds = array<i64: 1, 128>}, {pipeline_mode = #tpu.pipeline_mode<synchronous>, transform_indices = @transform_5, window_bounds = array<i64: 128, 4>}, {pipeline_mode = #tpu.pipeline_mode<synchronous>, transform_indices = @transform_6, window_bounds = array<i64: 1, 4>}, {transform_indices = @transform_7, window_bounds = array<i64: 8, 4>}]} {
    %c0 = arith.constant 0 : index
    %c0_0 = arith.constant 0 : index
    %0 = vector.load %arg1[%c0, %c0_0] : memref<8x128xf32, #tpu.memory_space<vmem>>, vector<8x128xf32>
    %1 = arith.truncf %0 : vector<8x128xf32> to vector<8x128xbf16>
    %c0_1 = arith.constant 0 : index
    %c0_2 = arith.constant 0 : index
    %2 = vector.load %arg2[%c0_1, %c0_2] : memref<128x256xbf16, #tpu.memory_space<vmem>>, vector<128x256xbf16>
    %cst = arith.constant dense<0.000000e+00> : vector<8x256xf32>
    %3 = tpu.matmul %1, %2, %cst {dimension_numbers = #tpu.dot_dimension_numbers<[1], [0], [0], [1], [0, 0, 1, 1], [], []>} : vector<8x128xbf16>, vector<128x256xbf16>, vector<8x256xf32> -> vector<8x256xf32>
    %c0_3 = arith.constant 0 : index
    %c0_4 = arith.constant 0 : index
    %4 = vector.load %arg3[%c0_3, %c0_4] : memref<1x256xf32, #tpu.memory_space<vmem>>, vector<1x256xf32>
    %5 = vector.broadcast %4 : vector<1x256xf32> to vector<8x256xf32>
    %6 = arith.addf %3, %5 : vector<8x256xf32>
    %cst_5 = arith.constant 0.000000e+00 : f32
    %7 = vector.broadcast %cst_5 : f32 to vector<8x256xf32>
    %8 = arith.maximumf %6, %7 : vector<8x256xf32>
    %9 = arith.truncf %8 : vector<8x256xf32> to vector<8x256xbf16>
    %c0_6 = arith.constant 0 : index
    %c0_7 = arith.constant 0 : index
    %10 = vector.load %arg4[%c0_6, %c0_7] : memref<256x128xbf16, #tpu.memory_space<vmem>>, vector<256x128xbf16>
    %cst_8 = arith.constant dense<0.000000e+00> : vector<8x128xf32>
    %11 = tpu.matmul %9, %10, %cst_8 {dimension_numbers = #tpu.dot_dimension_numbers<[1], [0], [0], [1], [0, 0, 1, 1], [], []>} : vector<8x256xbf16>, vector<256x128xbf16>, vector<8x128xf32> -> vector<8x128xf32>
    %c0_9 = arith.constant 0 : index
    %c0_10 = arith.constant 0 : index
    %12 = vector.load %arg5[%c0_9, %c0_10] : memref<1x128xf32, #tpu.memory_space<vmem>>, vector<1x128xf32>
    %13 = vector.broadcast %12 : vector<1x128xf32> to vector<8x128xf32>
    %14 = arith.addf %11, %13 : vector<8x128xf32>
    %cst_11 = arith.constant 0.000000e+00 : f32
    %15 = vector.broadcast %cst_11 : f32 to vector<8x128xf32>
    %16 = arith.maximumf %14, %15 : vector<8x128xf32>
    %17 = arith.truncf %16 : vector<8x128xf32> to vector<8x128xbf16>
    %c0_12 = arith.constant 0 : index
    %c0_13 = arith.constant 0 : index
    %18 = vector.load %arg6[%c0_12, %c0_13] : memref<128x4xbf16, #tpu.memory_space<vmem>>, vector<128x4xbf16>
    %cst_14 = arith.constant dense<0.000000e+00> : vector<8x4xf32>
    %19 = tpu.matmul %17, %18, %cst_14 {dimension_numbers = #tpu.dot_dimension_numbers<[1], [0], [0], [1], [0, 0, 1, 1], [], []>} : vector<8x128xbf16>, vector<128x4xbf16>, vector<8x4xf32> -> vector<8x4xf32>
    %c0_15 = arith.constant 0 : index
    %c0_16 = arith.constant 0 : index
    %20 = vector.load %arg7[%c0_15, %c0_16] : memref<1x4xf32, #tpu.memory_space<vmem>>, vector<1x4xf32>
    %21 = vector.broadcast %20 : vector<1x4xf32> to vector<8x4xf32>
    %22 = arith.addf %19, %21 : vector<8x4xf32>
    %cst_17 = arith.constant 0.000000e+00 : f32
    %23 = vector.broadcast %cst_17 : f32 to vector<8x4xf32>
    %24 = arith.maximumf %22, %23 : vector<8x4xf32>
    %c0_18 = arith.constant 0 : index
    %c0_19 = arith.constant 0 : index
    %25 = vector.load %arg8[%c0_18, %c0_19] : memref<8x4xf32, #tpu.memory_space<vmem>>, vector<8x4xf32>
    tpu.vector_store %arg8[%c0_18, %c0_19], %24 {strides = array<i32>} : memref<8x4xf32, #tpu.memory_space<vmem>>, vector<8x4xf32>,
    return
  }
  func.func @transform_0(%arg0: i32) -> (i32, i32) {
    %c0_i32 = arith.constant 0 : i32
    %c0_i32_0 = arith.constant 0 : i32
    return %arg0, %c0_i32 : i32, i32
  }
  func.func @transform_1(%arg0: i32) -> (i32, i32) {
    %c0_i32 = arith.constant 0 : i32
    %c0_i32_0 = arith.constant 0 : i32
    %c0_i32_1 = arith.constant 0 : i32
    return %c0_i32, %c0_i32_0 : i32, i32
  }
  func.func @transform_2(%arg0: i32) -> (i32, i32) {
    %c0_i32 = arith.constant 0 : i32
    %c0_i32_0 = arith.constant 0 : i32
    %c0_i32_1 = arith.constant 0 : i32
    return %c0_i32, %c0_i32_0 : i32, i32
  }
  func.func @transform_3(%arg0: i32) -> (i32, i32) {
    %c0_i32 = arith.constant 0 : i32
    %c0_i32_0 = arith.constant 0 : i32
    %c0_i32_1 = arith.constant 0 : i32
    return %c0_i32, %c0_i32_0 : i32, i32
  }
  func.func @transform_4(%arg0: i32) -> (i32, i32) {
    %c0_i32 = arith.constant 0 : i32
    %c0_i32_0 = arith.constant 0 : i32
    %c0_i32_1 = arith.constant 0 : i32
    return %c0_i32, %c0_i32_0 : i32, i32
  }
  func.func @transform_5(%arg0: i32) -> (i32, i32) {
    %c0_i32 = arith.constant 0 : i32
    %c0_i32_0 = arith.constant 0 : i32
    %c0_i32_1 = arith.constant 0 : i32
    return %c0_i32, %c0_i32_0 : i32, i32
  }
  func.func @transform_6(%arg0: i32) -> (i32, i32) {
    %c0_i32 = arith.constant 0 : i32
    %c0_i32_0 = arith.constant 0 : i32
    %c0_i32_1 = arith.constant 0 : i32
    return %c0_i32, %c0_i32_0 : i32, i32
  }
  func.func @transform_7(%arg0: i32) -> (i32, i32) {
    %c0_i32 = arith.constant 0 : i32
    %c0_i32_0 = arith.constant 0 : i32
    return %arg0, %c0_i32 : i32, i32
  }
}

</mosaic_0001>

<bundles_post_ra>
// kernel: tpu_custom_call.1
= control target key start
LH: loop header
LB: loop body
LE: loop exit
PB: predicated region body
PF: predicated region fallthrough
CT: control target
= control target key end

     0   :  { %12 = vsyncpa [#allocation3], 0  ;;  %s793_s0 = inlined_call_operand.vmem [shape: f32[8,128], index: 0, kind: input, shape index: {}]   ;;  %s794_s1 = inlined_call_operand.hbm [shape: bf16[128,256], index: 1, kind: input, shape index: {}]   ;;  %s795_s2 = inlined_call_operand.vmem [shape: f32[1,256], index: 2, kind: input, shape index: {}]   ;;  %s796_s3 = inlined_call_operand.hbm [shape: bf16[256,128], index: 3, kind: input, shape index: {}]   ;;  %s797_s4 = inlined_call_operand.vmem [shape: f32[1,128], index: 4, kind: input, shape index: {}]   ;;  %s798_s5 = inlined_call_operand.vmem [shape: bf16[128,4], index: 5, kind: input, shape index: {}]   ;;  %s799_s6 = inlined_call_operand.vmem [shape: f32[1,4], index: 6, kind: input, shape index: {}]   ;;  %s800_s7 = inlined_call_operand.vmem [shape: f32[8,4], index: 7, kind: output, shape index: {}]  }
   0x1   :  { %s20_s26 = sshll.u32 %s794_s1, 4  ;;  %s21_s26 = int_to_ptr.hbm [resolvable:$true] %s20_s26 }
   0x2   :  { %13 = vsyncpa [#allocation5], 0  ;;  %s702_s27 = smov [#allocation2]   ;;  %s35_s8 = sshll.u32 %s796_s3, 4  ;;  %s36_s8 = int_to_ptr.hbm [resolvable:$true] %s35_s8 }
   0x3   :  { %s22_s28 = sshll.u32 %s702_s27, 4  ;;  %s703_s9 = smov 128   ;;  %s23_s28 = int_to_ptr.vmem [resolvable:$true] %s22_s28 }
   0x4   :  { %s704_s10 = smov 8   ;;  %s705_s11 = smov [#allocation4]  }
   0x5   :  { %28 = dma.hbm_to_vmem [thread:$0]  %s21_s26, 2048, %s23_s28, [#allocation3], %s703_s9, %s703_s9, %s704_s10  }
   0x6   :  { %s37_s12 = sshll.u32 %s705_s11, 4  ;;  %s706_s13 = smov 64   ;;  %s38_s12 = int_to_ptr.vmem [resolvable:$true] %s37_s12 }
   0x7   :  { %s707_s14 = smov 4  }
   0x8   :  { %43 = dma.hbm_to_vmem [thread:$0]  %s36_s8, 2048, %s38_s12, [#allocation5], %s706_s13, %s706_s13, %s707_s14  }
   0x9   :  { %698 = dma.done.wait [#allocation3], 2048  }
   0xa   :  { %699 = vsyncadd [#allocation3], 4294965248 }
   0xb   :  { %700 = dma.done.wait [#allocation5], 2048  }
   0xc   :  { %701 = vsyncadd [#allocation5], 4294965248  ;;  %v500_v0 = vld [vmem:[#allocation2 + $0x70] sm:$0xf]  ;;  %v617_v1 = vld [vmem:[#allocation2 + $0x74] sm:$0xf0] }
   0xd   :  { %v616_v2 = vld [vmem:[#allocation2 + $0x74] sm:$0xf]  ;;  %v501_v3 = vor.u32 %v617_v1, %v500_v0  ;;  %v502_v4 = vld [vmem:[#allocation2 + $0x78] sm:$0xf0]  ;;  %v492_v5 = vld [vmem:[#allocation2 + $0x60] sm:$0xf] }
   0xe   :  { %v615_v6 = vld [vmem:[#allocation2 + $0x64] sm:$0xf0]  ;;  %v505_v7 = vor.u32 %v616_v2, %v502_v4  ;;  %v614_v8 = vld [vmem:[#allocation2 + $0x64] sm:$0xf]  ;;  %v494_v9 = vld [vmem:[#allocation2 + $0x68] sm:$0xf0] }
   0xf   :  { %162 = vmatpush.bf16.msra.mxu0 %v501_v3  ;;  %v493_v10 = vor.u32 %v615_v6, %v492_v5  ;;  %v497_v11 = vor.u32 %v614_v8, %v494_v9  ;;  %v484_v12 = vld [vmem:[#allocation2 + $0x50] sm:$0xf]  ;;  %v613_v13 = vld [vmem:[#allocation2 + $0x54] sm:$0xf0]  ;;  %v612_v14 = vld [vmem:[#allocation2 + $0x54] sm:$0xf] }
  0x10   :  { %175 = vmatpush.bf16.msra.mxu1 %v505_v7  ;;  %v486_v15 = vld [vmem:[#allocation2 + $0x58] sm:$0xf0]  ;;  %v485_v16 = vor.u32 %v613_v13, %v484_v12  ;;  %v476_v18 = vld [vmem:[#allocation2 + $0x40] sm:$0xf]  ;;  %v611_v19 = vld [vmem:[#allocation2 + $0x44] sm:$0xf0] }
  0x11   :  { %v489_v17 = vor.u32 %v612_v14, %v486_v15  ;;  %v610_v20 = vld [vmem:[#allocation2 + $0x44] sm:$0xf]  ;;  %v478_v21 = vld [vmem:[#allocation2 + $0x48] sm:$0xf0]  ;;  %v477_v22 = vor.u32 %v611_v19, %v476_v18  ;;  %v625_v23 = vld [vmem:[#allocation4 + $0x38] sm:$0xff]  ;;  %vm434_vm0 = vcmask 31744  }
  0x12   :  { %v633_v24 = vld [vmem:[#allocation4 + $0x78] sm:$0xff]  ;;  %v481_v25 = vor.u32 %v610_v20, %v478_v21  ;;  %v468_v26 = vld [vmem:[#allocation2 + $0x30] sm:$0xf]  ;;  %v608_v28 = vld [vmem:[#allocation2 + $0x34] sm:$0xf]  ;;  %324 = vmatpush.bf16.msra.mxu2 %v625_v23 }
  0x13   :  { %163 = vmatpush.bf16.msra.mxu0 %v493_v10  ;;  %v609_v27 = vld [vmem:[#allocation2 + $0x34] sm:$0xf0]  ;;  %v470_v29 = vld [vmem:[#allocation2 + $0x38] sm:$0xf0]  ;;  %337 = vmatpush.bf16.msra.mxu3 %v633_v24  ;;  %v624_v30 = vld [vmem:[#allocation4 + $0x30] sm:$0xff] }
  0x14   :  { %176 = vmatpush.bf16.msra.mxu1 %v497_v11  ;;  %v632_v31 = vld [vmem:[#allocation4 + $0x70] sm:$0xff]  ;;  %v469_v32 = vor.u32 %v609_v27, %v468_v26  ;;  %v473_v33 = vor.u32 %v608_v28, %v470_v29  ;;  %v460_v34 = vld [vmem:[#allocation2 + $0x20] sm:$0xf]  ;;  %v607_v35 = vld [vmem:[#allocation2 + $0x24] sm:$0xf0] }
  0x15   :  { %v606_v36 = vld [vmem:[#allocation2 + $0x24] sm:$0xf]  ;;  %v462_v37 = vld [vmem:[#allocation2 + $0x28] sm:$0xf0]  ;;  %v461_v40 = vor.u32 %v607_v35, %v460_v34  ;;  %v452_v42 = vld [vmem:[#allocation2 + $0x10] sm:$0xf] }
  0x16   :  { %325 = vmatpush.bf16.msra.mxu2 %v624_v30  ;;  %v623_v38 = vld [vmem:[#allocation4 + $0x28] sm:$0xff]  ;;  %v465_v41 = vor.u32 %v606_v36, %v462_v37  ;;  %v605_v43 = vld [vmem:[#allocation2 + $0x14] sm:$0xf0]  ;;  %v604_v44 = vld [vmem:[#allocation2 + $0x14] sm:$0xf] }
  0x17   :  { %164 = vmatpush.bf16.msra.mxu0 %v485_v16  ;;  %338 = vmatpush.bf16.msra.mxu3 %v632_v31  ;;  %v631_v39 = vld [vmem:[#allocation4 + $0x68] sm:$0xff]  ;;  %v454_v45 = vld [vmem:[#allocation2 + $0x18] sm:$0xf0]  ;;  %v622_v46 = vld [vmem:[#allocation4 + $0x20] sm:$0xff]  ;;  %v453_v48 = vor.u32 %v605_v43, %v452_v42 }
  0x18   :  { %177 = vmatpush.bf16.msra.mxu1 %v489_v17  ;;  %v630_v47 = vld [vmem:[#allocation4 + $0x60] sm:$0xff]  ;;  %v457_v49 = vor.u32 %v604_v44, %v454_v45  ;;  %v603_v51 = vld [vmem:[#allocation2 + $0x4] sm:$0xf0]  ;;  %v446_v53 = vld [vmem:[#allocation2 + $0x8] sm:$0xf0] }
  0x19   :  { %v444_v50 = vld [vmem:[#allocation2] sm:$0xf]  ;;  %v602_v52 = vld [vmem:[#allocation2 + $0x4] sm:$0xf]  ;;  %v621_v54 = vld [vmem:[#allocation4 + $0x18] sm:$0xff] }
  0x1a   :  { %326 = vmatpush.bf16.msra.mxu2 %v623_v38  ;;  %v629_v55 = vld [vmem:[#allocation4 + $0x58] sm:$0xff]  ;;  %v445_v56 = vor.u32 %v603_v51, %v444_v50  ;;  %v58_v57 = vld [vmem:[%s793_s0] sm:$0xff]  ;;  %v449_v58 = vor.u32 %v602_v52, %v446_v53  ;;  %v620_v59 = vld [vmem:[#allocation4 + $0x10] sm:$0xff] }
  0x1b   :  { %165 = vmatpush.bf16.msra.mxu0 %v477_v22  ;;  %339 = vmatpush.bf16.msra.mxu3 %v631_v39  ;;  %v628_v60 = vld [vmem:[#allocation4 + $0x50] sm:$0xff]  ;;  %v59_v61 = vpack.c.bf16 %v58_v57, %v58_v57  ;;  %v619_v62 = vld [vmem:[#allocation4 + $0x8] sm:$0xff]  ;;  %v618_v0 = vld [vmem:[#allocation4] sm:$0xff] }
  0x1c   :  { %178 = vmatpush.bf16.msra.mxu1 %v481_v25  ;;  %v627_v63 = vld [vmem:[#allocation4 + $0x48] sm:$0xff]  ;;  %v626_v1 = vld [vmem:[#allocation4 + $0x40] sm:$0xff]  ;;  %v641_v2 = vld [vmem:[%s798_s5 + $0x38] sm:$0xff] }
  0x1d   :  { %v640_v3 = vld [vmem:[%s798_s5 + $0x30] sm:$0xff]  ;;  %v639_v4 = vld [vmem:[%s798_s5 + $0x28] sm:$0xff]  ;;  %v638_v5 = vld [vmem:[%s798_s5 + $0x20] sm:$0xff] }
  0x1e   :  { %327 = vmatpush.bf16.msra.mxu2 %v622_v46  ;;  %v637_v6 = vld [vmem:[%s798_s5 + $0x18] sm:$0xff]  ;;  %v76_v7 = vld [vmem:[%s795_s2] sm:$0x3]  ;;  %v636_v8 = vld [vmem:[%s798_s5 + $0x10] sm:$0xff] }
  0x1f   :  { %166 = vmatpush.bf16.msra.mxu0 %v469_v32  ;;  %340 = vmatpush.bf16.msra.mxu3 %v630_v47  ;;  %v78_v9 = vperm.slane %v76_v7, 0  ;;  %v79_v10 = vperm.slane %v76_v7, 1  ;;  %v635_v21 = vld [vmem:[%s798_s5 + $0x8] sm:$0xff]  ;;  %v634_v22 = vld [vmem:[%s798_s5] sm:$0xff] }
  0x20   :  { %179 = vmatpush.bf16.msra.mxu1 %v473_v33  ;;  %v648_v23 = vld [vmem:[%s797_s4] ss:$0 sm:$0xff] }
  0x21   :  { %v649_v32 = vld [vmem:[%s799_s6] ss:$0 sm:$0xff] }
  0x22   :  { %328 = vmatpush.bf16.msra.mxu2 %v621_v54 }
  0x23   :  { %167 = vmatpush.bf16.msra.mxu0 %v461_v40  ;;  %341 = vmatpush.bf16.msra.mxu3 %v629_v55 }
  0x24   :  { %180 = vmatpush.bf16.msra.mxu1 %v465_v41 }
  0x26   :  { %329 = vmatpush.bf16.msra.mxu2 %v620_v59 }
  0x27   :  { %168 = vmatpush.bf16.msra.mxu0 %v453_v48  ;;  %342 = vmatpush.bf16.msra.mxu3 %v628_v60 }
  0x28   :  { %181 = vmatpush.bf16.msra.mxu1 %v457_v49 }
  0x2a   :  { %330 = vmatpush.bf16.msra.mxu2 %v619_v62 }
  0x2b   :  { %169 = vmatpush.bf16.msra.mxu0 %v445_v56  ;;  %343 = vmatpush.bf16.msra.mxu3 %v627_v63 }
  0x2c   :  { %182 = vmatpush.bf16.msra.mxu1 %v449_v58 }
  0x2e   :  { %170 = vmatmul.bf16.vlgmr.msra.gmra.mxu0 %v59_v61  ;;  %331 = vmatpush.bf16.msra.mxu2 %v618_v0 }
  0x2f   :  { %183 = vmatmul.bf16.vlgmr.msra.gmra.mxu1 %v59_v61  ;;  %344 = vmatpush.bf16.msra.mxu3 %v626_v1 }
  0x30   :  { %420 = vmatpush.bf16.msrb.mxu0 %v641_v2 }
  0x34   :  { %421 = vmatpush.bf16.msrb.mxu0 %v640_v3 }
  0x38   :  { %422 = vmatpush.bf16.msrb.mxu0 %v639_v4 }
  0x3c   :  { %423 = vmatpush.bf16.msrb.mxu0 %v638_v5 }
  0x40   :  { %424 = vmatpush.bf16.msrb.mxu0 %v637_v6 }
  0x44   :  { %425 = vmatpush.bf16.msrb.mxu0 %v636_v8 }
  0x48   :  { %426 = vmatpush.bf16.msrb.mxu0 %v635_v21 }
  0x4c   :  { %427 = vmatpush.bf16.msrb.mxu0 %v634_v22 }
  0xab   :  { %v171_v11 = vpop.f32.mrf.mxu0 }
  0xac   :  { %v172_v12 = vadd.f32 %v171_v11, %v78_v9  ;;  %v184_v13 = vpop.f32.mrf.mxu1 }
  0xad   :  { %v185_v14 = vadd.f32 %v184_v13, %v79_v10 }
  0xae   :  { %v188_v15 = vmax.f32 %v172_v12, 0.0 }
  0xaf   :  { %v189_v16 = vmax.f32 %v185_v14, 0.0 }
  0xb0   :  { %v190_v17 = vpack.c.bf16 %v188_v15, %v188_v15 }
  0xb1   :  { %v191_v18 = vpack.c.bf16 %v189_v16, %v189_v16 }
  0xb2   :  { %332 = vmatmul.bf16.vlgmr.msra.gmra.mxu2 %v190_v17 }
  0xb3   :  { %345 = vmatmul.bf16.vlgmr.msra.gmra.mxu3 %v191_v18  ;;  %v173_v19 = vpop.f32.mrf.mxu0 }
  0xb4   :  { %v186_v20 = vpop.f32.mrf.mxu1 }
 0x135   :  { %v333_v24 = vpop.f32.mrf.mxu2 }
 0x136   :  { %v334_v25 = vadd.f32 %v648_v23, %v333_v24  ;;  %v346_v26 = vpop.f32.mrf.mxu3 }
 0x138   :  { %v347_v27 = vadd.f32 %v346_v26, %v334_v25 }
 0x13a   :  { %v350_v28 = vmax.f32 %v347_v27, 0.0 }
 0x13c   :  { %v351_v29 = vpack.c.bf16 %v350_v28, %v350_v28 }
 0x13d   :  { %v335_v30 = vpop.f32.mrf.mxu2 }
 0x13e   :  { %v348_v31 = vpop.f32.mrf.mxu3  ;;  %428 = vmatmul.bf16.vlgmr.msrb.gmra.mxu0 %v351_v29 }
 0x1bb   :  { %v429_v33 = vpop.f32.mrf.mxu0 }
 0x1bc   :  { %v430_v34 = vadd.f32 %v649_v32, %v429_v33 }
 0x1be   :  { %v433_v35 = vmax.f32 %v430_v34, 0.0 }
 0x1c0   :  { %435 = vst.msk [vmem:[%s800_s7] sm:$0xff] %vm434_vm0, %v433_v35 }
 0x1c3   :  { %v431_v36 = vpop.f32.mrf.mxu0 }
 0x1c4   :  { %440 = vsyncpa [#allocation3], 1 }
 0x1c5   :  { %441 = vsyncpa [#allocation5], 1 }

</bundles_post_ra>
